<compile_context>
chip_gen: v7x
topology: tpu7x:2x2x1
jax: 0.10.0
libtpu: 0.0.40
codegen_flags: <defaults>
</compile_context>

<pallas_src>
import functools

import numpy as np
import jax
import jax.numpy as jnp
from jax import lax
from jax.experimental import pallas as pl
from jax.experimental.pallas import tpu as pltpu


def _radius_d2_kernel(pos_ref, posT_ref, bcol_ref, brow_ref, out_ref, *, cutoff2):
    """One (TM, TN) tile of the masked pairwise squared-distance matrix.

    out = d2 for valid pairs (same molecule, d2 < cutoff^2, not a self loop),
    +inf otherwise.  Threshold test is done in f32; only the store is bf16.
    """
    pos = pos_ref[...]       # (TM, 3)  f32  target atoms (rows of the matrix)
    posT = posT_ref[...]     # (3, TN)  f32  source atoms (cols)
    b_col = bcol_ref[...]    # (TM, 1)  i32
    b_row = brow_ref[...]    # (1, TN)  i32

    tm, tn = out_ref.shape

    # Per-coordinate diff-and-square on the VPU (exact, no MXU, no XLU reduce).
    dx = pos[:, 0:1] - posT[0:1, :]
    dy = pos[:, 1:2] - posT[1:2, :]
    dz = pos[:, 2:3] - posT[2:3, :]
    d2 = dx * dx + dy * dy + dz * dz                       # f32

    valid = (b_col == b_row) & (d2 < cutoff2)
    masked = jnp.where(valid, d2, jnp.inf)
    out_ref[...] = masked.astype(out_ref.dtype)

    # Self-loop exclusion: only tiles whose row range overlaps their column
    # range can contain diagonal elements -> gate the iota work with pl.when.
    i0 = pl.program_id(0) * tm
    j0 = pl.program_id(1) * tn

    @pl.when((i0 < j0 + tn) & (j0 < i0 + tm))
    def _():
        ii = i0 + lax.broadcasted_iota(jnp.int32, (tm, tn), 0)
        jj = j0 + lax.broadcasted_iota(jnp.int32, (tm, tn), 1)
        out_ref[...] = jnp.where(ii == jj, jnp.inf, masked).astype(out_ref.dtype)


def _round_up(x, m):
    return ((x + m - 1) // m) * m


def radius_interaction_graph(pos, batch, cutoff=10.0, max_num_neighbors=32):
    """Matches RadiusInteractionGraph.forward: returns (edge_index, edge_weight).

    edge_index: int32 [2, N*K], row = source atom, col = target atom, padded
                with -1.
    edge_weight: float32 [N*K], |pos[row] - pos[col]| for real edges, 0 for pad.
    """
    n = int(pos.shape[0])
    pos = pos.astype(jnp.float32)
    batch = batch.astype(jnp.int32)

    # ---- tile sizes / rectangular padding (lane-dense, VMEM-safe) ----------
    ncol = _round_up(n, 128)
    if ncol <= 1024:
        tn = ncol                              # single lane-dense column tile
    else:
        tn = 1024
        ncol = _round_up(n, tn)
    mrow = _round_up(n, 8)
    if mrow <= 512:
        tm = mrow                              # single row tile
    else:
        tm = 512
        mrow = _round_up(n, tm)

    rpad = mrow - n
    cpad = ncol - n
    # Unique negative ids for padded atoms -> never "same molecule" as anything.
    row_pad_ids = -1 - jnp.arange(rpad, dtype=jnp.int32)
    col_pad_ids = -1 - rpad - jnp.arange(cpad, dtype=jnp.int32)

    pos_rows = jnp.zeros((mrow, 3), jnp.float32).at[:n, :].set(pos)
    pos_cols_T = jnp.zeros((3, ncol), jnp.float32).at[:, :n].set(pos.T)
    b_col = jnp.concatenate([batch, row_pad_ids]).reshape(mrow, 1)
    b_row = jnp.concatenate([batch, col_pad_ids]).reshape(1, ncol)

    kernel = functools.partial(_radius_d2_kernel, cutoff2=float(cutoff) ** 2)

    d2 = pl.pallas_call(
        kernel,
        out_shape=jax.ShapeDtypeStruct((mrow, ncol), jnp.bfloat16),
        grid=(mrow // tm, ncol // tn),
        in_specs=[
            pl.BlockSpec((tm, 3), lambda i, j: (i, 0)),
            pl.BlockSpec((3, tn), lambda i, j: (0, j)),
            pl.BlockSpec((tm, 1), lambda i, j: (i, 0)),
            pl.BlockSpec((1, tn), lambda i, j: (0, j)),
        ],
        out_specs=pl.BlockSpec((tm, tn), lambda i, j: (i, j)),
        compiler_params=pltpu.CompilerParams(
            dimension_semantics=("parallel", "parallel"),
            vmem_limit_bytes=32 * 1024 * 1024,
        ),
    )(pos_rows, pos_cols_T, b_col, b_row)

    # ---- glue: per-target nearest-K selection on the padded matrix ---------
    k = int(min(max_num_neighbors, n))
    neg, neigh = lax.top_k(-d2, k)             # K smallest d2 per row (mrow, k)
    neg = neg[:n]                              # drop padded rows AFTER top_k
    neigh = neigh[:n].astype(jnp.int32)
    slot_ok = neg > -jnp.inf                   # finite <=> valid (decided in-kernel, f32)

    # Exact f32 edge weights recomputed from positions for the selected edges.
    nb = jnp.clip(neigh, 0, n - 1)             # invalid slots may point at col-pads
    diff = pos[nb] - pos[:, None, :]           # (n, k, 3)
    w = jnp.sqrt(jnp.sum(diff * diff, axis=-1))

    tgt = jnp.broadcast_to(jnp.arange(n, dtype=jnp.int32)[:, None], (n, k))
    row = jnp.where(slot_ok, nb, -1).reshape(-1)     # sources (neighbors)
    col = jnp.where(slot_ok, tgt, -1).reshape(-1)    # targets
    edge_index = jnp.stack([row, col], axis=0)
    edge_weight = jnp.where(slot_ok, w, 0.0).reshape(-1)
    return edge_index, edge_weight


if __name__ == "__main__":
    key = jax.random.PRNGKey(0)
    N = 16                      # atoms total, 2 molecules of 8 atoms
    CUTOFF = 2.0
    MAX_NEIGHBORS = 8

    pos = jax.random.uniform(key, (N, 3), dtype=jnp.float32) * 3.0
    batch = jnp.concatenate([jnp.zeros(N // 2, jnp.int32),
                             jnp.ones(N // 2, jnp.int32)])

    edge_index, edge_weight = radius_interaction_graph(
        pos, batch, cutoff=CUTOFF, max_num_neighbors=MAX_NEIGHBORS)
    jax.block_until_ready((edge_index, edge_weight))

    # ---- sanity check against a tiny NumPy reference ------------------------
    ei = np.asarray(edge_index)
    ew = np.asarray(edge_weight)
    p = np.asarray(pos)
    b = np.asarray(batch)
    real = ei[0] >= 0
    r, c = ei[0][real], ei[1][real]
    d_ref = np.linalg.norm(p[r] - p[c], axis=-1)
    assert np.allclose(ew[real], d_ref, atol=1e-5)
    assert np.all(d_ref < CUTOFF)
    assert np.all(b[r] == b[c])
    assert np.all(r != c)
    # every qualifying pair must appear (neighbor counts < MAX_NEIGHBORS here)
    full = np.linalg.norm(p[:, None, :] - p[None, :, :], axis=-1)
    ref_mask = (full < CUTOFF) & (b[:, None] == b[None, :]) & ~np.eye(N, dtype=bool)
    assert real.sum() == ref_mask.sum()

    print("KERNEL_OK")
</pallas_src>

<mosaic_0001>
module attributes {stable_mosaic.version = 11 : i64} {
  func.func @_radius_d2_kernel(%arg0: i32, %arg1: i32, %arg2: memref<16x3xf32, #tpu.memory_space<vmem>>, %arg3: memref<3x128xf32, #tpu.memory_space<vmem>>, %arg4: memref<16x1xi32, #tpu.memory_space<vmem>>, %arg5: memref<1x128xi32, #tpu.memory_space<vmem>>, %arg6: memref<16x128xbf16, #tpu.memory_space<vmem>>) attributes {dimension_semantics = [#tpu.dimension_semantics<parallel>, #tpu.dimension_semantics<parallel>], iteration_bounds = array<i64: 1, 1>, scalar_prefetch = 0 : i64, scratch_operands = 0 : i64, tpu.core_type = #tpu.core_type<tc>, window_params = [{transform_indices = @transform_0, window_bounds = array<i64: 16, 3>}, {transform_indices = @transform_1, window_bounds = array<i64: 3, 128>}, {transform_indices = @transform_2, window_bounds = array<i64: 16, 1>}, {transform_indices = @transform_3, window_bounds = array<i64: 1, 128>}, {transform_indices = @transform_4, window_bounds = array<i64: 16, 128>}]} {
    %c0 = arith.constant 0 : index
    %c0_0 = arith.constant 0 : index
    %0 = vector.load %arg2[%c0, %c0_0] : memref<16x3xf32, #tpu.memory_space<vmem>>, vector<16x3xf32>
    %c0_1 = arith.constant 0 : index
    %c0_2 = arith.constant 0 : index
    %1 = vector.load %arg3[%c0_1, %c0_2] : memref<3x128xf32, #tpu.memory_space<vmem>>, vector<3x128xf32>
    %c0_3 = arith.constant 0 : index
    %c0_4 = arith.constant 0 : index
    %2 = vector.load %arg4[%c0_3, %c0_4] : memref<16x1xi32, #tpu.memory_space<vmem>>, vector<16x1xi32>
    %c0_5 = arith.constant 0 : index
    %c0_6 = arith.constant 0 : index
    %3 = vector.load %arg5[%c0_5, %c0_6] : memref<1x128xi32, #tpu.memory_space<vmem>>, vector<1x128xi32>
    %4 = vector.extract_strided_slice %0 {offsets = [0, 0], sizes = [16, 1], strides = [1, 1]} : vector<16x3xf32> to vector<16x1xf32>
    %5 = vector.extract_strided_slice %1 {offsets = [0, 0], sizes = [1, 128], strides = [1, 1]} : vector<3x128xf32> to vector<1x128xf32>
    %6 = vector.broadcast %4 : vector<16x1xf32> to vector<16x128xf32>
    %7 = vector.broadcast %5 : vector<1x128xf32> to vector<16x128xf32>
    %8 = arith.subf %6, %7 : vector<16x128xf32>
    %9 = vector.extract_strided_slice %0 {offsets = [0, 1], sizes = [16, 1], strides = [1, 1]} : vector<16x3xf32> to vector<16x1xf32>
    %10 = vector.extract_strided_slice %1 {offsets = [1, 0], sizes = [1, 128], strides = [1, 1]} : vector<3x128xf32> to vector<1x128xf32>
    %11 = vector.broadcast %9 : vector<16x1xf32> to vector<16x128xf32>
    %12 = vector.broadcast %10 : vector<1x128xf32> to vector<16x128xf32>
    %13 = arith.subf %11, %12 : vector<16x128xf32>
    %14 = vector.extract_strided_slice %0 {offsets = [0, 2], sizes = [16, 1], strides = [1, 1]} : vector<16x3xf32> to vector<16x1xf32>
    %15 = vector.extract_strided_slice %1 {offsets = [2, 0], sizes = [1, 128], strides = [1, 1]} : vector<3x128xf32> to vector<1x128xf32>
    %16 = vector.broadcast %14 : vector<16x1xf32> to vector<16x128xf32>
    %17 = vector.broadcast %15 : vector<1x128xf32> to vector<16x128xf32>
    %18 = arith.subf %16, %17 : vector<16x128xf32>
    %19 = arith.mulf %8, %8 : vector<16x128xf32>
    %20 = arith.mulf %13, %13 : vector<16x128xf32>
    %21 = arith.addf %19, %20 : vector<16x128xf32>
    %22 = arith.mulf %18, %18 : vector<16x128xf32>
    %23 = arith.addf %21, %22 : vector<16x128xf32>
    %24 = vector.broadcast %2 : vector<16x1xi32> to vector<16x128xi32>
    %25 = vector.broadcast %3 : vector<1x128xi32> to vector<16x128xi32>
    %26 = arith.cmpi eq, %24, %25 : vector<16x128xi32>
    %cst = arith.constant 4.000000e+00 : f32
    %27 = vector.broadcast %cst : f32 to vector<16x128xf32>
    %28 = arith.cmpf olt, %23, %27 : vector<16x128xf32>
    %29 = arith.andi %26, %28 : vector<16x128xi1>
    %cst_7 = arith.constant 0x7F800000 : f32
    %30 = vector.broadcast %cst_7 : f32 to vector<16x128xf32>
    %31 = arith.select %29, %23, %30 : vector<16x128xi1>, vector<16x128xf32>
    %32 = arith.truncf %31 : vector<16x128xf32> to vector<16x128xbf16>
    %c0_8 = arith.constant 0 : index
    %c0_9 = arith.constant 0 : index
    %33 = vector.load %arg6[%c0_8, %c0_9] : memref<16x128xbf16, #tpu.memory_space<vmem>>, vector<16x128xbf16>
    tpu.vector_store %arg6[%c0_8, %c0_9], %32 {strides = array<i32>} : memref<16x128xbf16, #tpu.memory_space<vmem>>, vector<16x128xbf16>,
    %c16_i32 = arith.constant 16 : i32
    %34 = arith.muli %arg0, %c16_i32 : i32
    %c128_i32 = arith.constant 128 : i32
    %35 = arith.muli %arg1, %c128_i32 : i32
    %c128_i32_10 = arith.constant 128 : i32
    %36 = arith.addi %35, %c128_i32_10 : i32
    %37 = arith.cmpi slt, %34, %36 : i32
    %c16_i32_11 = arith.constant 16 : i32
    %38 = arith.addi %34, %c16_i32_11 : i32
    %39 = arith.cmpi slt, %35, %38 : i32
    %40 = arith.andi %37, %39 : i1
    %41 = arith.extui %40 : i1 to i32
    %c0_i32 = arith.constant 0 : i32
    %42 = arith.cmpi ne, %41, %c0_i32 : i32
    scf.if %42 {
      %43 = tpu.iota {dimensions = array<i32: 0>} : vector<16x128xi32>
      %44 = vector.broadcast %34 : i32 to vector<16x128xi32>
      %45 = arith.addi %44, %43 : vector<16x128xi32>
      %46 = tpu.iota {dimensions = array<i32: 1>} : vector<16x128xi32>
      %47 = vector.broadcast %35 : i32 to vector<16x128xi32>
      %48 = arith.addi %47, %46 : vector<16x128xi32>
      %49 = arith.cmpi eq, %45, %48 : vector<16x128xi32>
      %cst_12 = arith.constant 0x7F800000 : f32
      %50 = vector.broadcast %cst_12 : f32 to vector<16x128xf32>
      %51 = arith.select %49, %50, %31 : vector<16x128xi1>, vector<16x128xf32>
      %52 = arith.truncf %51 : vector<16x128xf32> to vector<16x128xbf16>
      %c0_13 = arith.constant 0 : index
      %c0_14 = arith.constant 0 : index
      %53 = vector.load %arg6[%c0_13, %c0_14] : memref<16x128xbf16, #tpu.memory_space<vmem>>, vector<16x128xbf16>
      tpu.vector_store %arg6[%c0_13, %c0_14], %52 {strides = array<i32>} : memref<16x128xbf16, #tpu.memory_space<vmem>>, vector<16x128xbf16>,
    } else {
    }
    return
  }
  func.func @transform_0(%arg0: i32, %arg1: i32) -> (i32, i32) {
    %c0_i32 = arith.constant 0 : i32
    %c0_i32_0 = arith.constant 0 : i32
    return %arg0, %c0_i32 : i32, i32
  }
  func.func @transform_1(%arg0: i32, %arg1: i32) -> (i32, i32) {
    %c0_i32 = arith.constant 0 : i32
    %c0_i32_0 = arith.constant 0 : i32
    return %c0_i32, %arg1 : i32, i32
  }
  func.func @transform_2(%arg0: i32, %arg1: i32) -> (i32, i32) {
    %c0_i32 = arith.constant 0 : i32
    %c0_i32_0 = arith.constant 0 : i32
    return %arg0, %c0_i32 : i32, i32
  }
  func.func @transform_3(%arg0: i32, %arg1: i32) -> (i32, i32) {
    %c0_i32 = arith.constant 0 : i32
    %c0_i32_0 = arith.constant 0 : i32
    return %c0_i32, %arg1 : i32, i32
  }
  func.func @transform_4(%arg0: i32, %arg1: i32) -> (i32, i32) {
    %c0_i32 = arith.constant 0 : i32
    return %arg0, %arg1 : i32, i32
  }
}

</mosaic_0001>

<bundles_post_ra>
// kernel: tpu_custom_call.1
= control target key start
LH: loop header
LB: loop body
LE: loop exit
PB: predicated region body
PF: predicated region fallthrough
CT: control target
= control target key end

     0   :  { %v211_v1 = vmov 1   ;;  %v212_v2 = vmov 0   ;;  %s272_s0 = inlined_call_operand.vmem [shape: f32[16,3], index: 0, kind: input, shape index: {}]   ;;  %s273_s1 = inlined_call_operand.vmem [shape: f32[3,128], index: 1, kind: input, shape index: {}]   ;;  %s274_s2 = inlined_call_operand.vmem [shape: s32[16,1], index: 2, kind: input, shape index: {}]   ;;  %s275_s3 = inlined_call_operand.vmem [shape: s32[1,128], index: 3, kind: input, shape index: {}]   ;;  %s276_s4 = inlined_call_operand.hbm [shape: bf16[16,128], index: 4, kind: output, shape index: {}]  }
   0x1   :  { %v18_v0 = vld [vmem:[%s272_s0] sm:$0xff]  ;;  %182 = vset.pattern.permute.xlu1 %v211_v1  ;;  %181 = vset.pattern.permute.xlu0 %v212_v2 }
   0x2   :  { %9 = vsyncpa [#allocation3], 0  ;;  %41 = vperm.xlu1 %182, %v18_v0   ;;  %26 = vperm.xlu0 %181, %v18_v0   ;;  %v19_v3 = vld [vmem:[%s272_s0 + $0x8] sm:$0xff]  ;;  %v213_v4 = vmov 2   ;;  %v21_v5 = vld [vmem:[%s274_s2] sm:$0xff]  ;;  %v34_v7 = vlaneseq  ;;  %s214_s24 = smov [#allocation2]  }
   0x3   :  { %v22_v6 = vld [vmem:[%s274_s2 + $0x8] sm:$0xff]  ;;  %v20_v11 = vld [vmem:[%s273_s1] sm:$0x7]  ;;  %s145_s25 = sshll.u32 %s214_s24, 4  ;;  %s146_s25 = int_to_ptr.vmem [resolvable:$true] %s145_s25 }
   0x4   :  { %v35_v8 = vshrl.u32 %v34_v7, 7  ;;  %v123_v32 = vand.u32 127, %v34_v7  ;;  %v156_v37 = vld [vmem:[%s275_s3] ss:$0 sm:$0xff]  ;;  %s187_s3 = scalar_lea.vmem %s146_s25, 128  ;;  %p192_p1 = scmp.lt.s32.totalorder %s146_s25, %s146_s25 }
   0x5   :  { %p188_p0 = scmp.ne.s32.totalorder %s146_s25, %s187_s3  ;;  %p193_p2 = scmp.lt.s32.totalorder %s187_s3, %s187_s3 }
   0x6   :  { %45 = vperm.xlu1 %182, %v19_v3   ;;  %31 = vperm.xlu0 %181, %v19_v3   ;;  %v50_v9 = vsub.s32 1, %v35_v8  ;;  %v36_v10 = vsub.s32 0, %v35_v8  ;;  %v64_v16 = vsub.s32 2, %v35_v8  ;;  %v118_v38 = vadd.s32 8, %v35_v8 }
   0x7   :  { %vm126_vm2 = vcmp.eq.s32.totalorder %v35_v8, %v123_v32  ;;  %p194_p3 = por %p193_p2, %p192_p1 }
   0x8   :  { %v51_v12 = vrot.slane %v20_v11, %v50_v9  ;;  %v37_v14 = vrot.slane %v20_v11, %v36_v10  ;;  %v65_v23 = vrot.slane %v20_v11, %v64_v16  ;;  %vm127_vm6 = vcmp.eq.s32.totalorder %v118_v38, %v123_v32 }
   0x9   :  { %p195_p4 = pnand %p194_p3, %p188_p0 }
   0xa   :  { %184 = vset.pattern.permute.xlu1 %v213_v4  ;;  %183 = vset.pattern.permute.xlu0 %v213_v4 }
   0xb   :  { %59 = vperm.xlu1 %184, %v19_v3   ;;  %55 = vperm.xlu0 %183, %v18_v0  }
   0xf   :  { %185 = vset.pattern.permute.xlu1 %v212_v2  ;;  %186 = vset.pattern.permute.xlu0 %v212_v2 }
  0x10   :  { %79 = vperm.xlu1 %185, %v21_v5   ;;  %82 = vperm.xlu0 %186, %v22_v6  }
  0x81   :  { %v42_v13 = vpop.permute.xlu1 %41  ;;  %v27_v15 = vpop.permute.xlu0 %26 }
  0x82   :  { %v52_v17 = vsub.f32 %v42_v13, %v51_v12  ;;  %v38_v18 = vsub.f32 %v27_v15, %v37_v14 }
  0x84   :  { %v70_v24 = vmul.f32 %v52_v17, %v52_v17  ;;  %v68_v25 = vmul.f32 %v38_v18, %v38_v18 }
  0x85   :  { %v46_v19 = vpop.permute.xlu1 %45  ;;  %v32_v20 = vpop.permute.xlu0 %31 }
  0x86   :  { %v53_v21 = vsub.f32 %v46_v19, %v51_v12  ;;  %v39_v22 = vsub.f32 %v32_v20, %v37_v14  ;;  %v72_v33 = vadd.f32 %v70_v24, %v68_v25 }
  0x88   :  { %v71_v26 = vmul.f32 %v53_v21, %v53_v21  ;;  %v69_v27 = vmul.f32 %v39_v22, %v39_v22 }
  0x8a   :  { %v60_v28 = vpop.permute.xlu1 %59  ;;  %v56_v29 = vpop.permute.xlu0 %55  ;;  %v73_v34 = vadd.f32 %v71_v26, %v69_v27 }
  0x8b   :  { %v67_v30 = vsub.f32 %v60_v28, %v65_v23  ;;  %v66_v31 = vsub.f32 %v56_v29, %v65_v23 }
  0x8d   :  { %v75_v35 = vmul.f32 %v67_v30, %v67_v30  ;;  %v74_v36 = vmul.f32 %v66_v31, %v66_v31 }
  0x8f   :  { %v77_v39 = vadd.f32 %v75_v35, %v73_v34  ;;  %v76_v40 = vadd.f32 %v74_v36, %v72_v33  ;;  %v80_v41 = vpop.permute.xlu1 %79  ;;  %v83_v42 = vpop.permute.xlu0 %82 }
  0x90   :  { %vm88_vm0 = vcmp.eq.s32.totalorder %v80_v41, %v156_v37  ;;  %vm89_vm1 = vcmp.eq.s32.totalorder %v83_v42, %v156_v37 }
  0x91   :  { %vm90_vm3 = vcmp.lt.f32.partialorder %v76_v40, 4.0  ;;  %vm91_vm4 = vcmp.lt.f32.partialorder %v77_v39, 4.0 }
  0x92   :  { %vm92_vm5 = vmand %vm88_vm0, %vm90_vm3 }
  0x93   :  { %v94_v43 = vsel %vm92_vm5, %v76_v40, inf  ;;  %vm93_vm7 = vmand %vm89_vm1, %vm91_vm4 }
  0x94   :  { %v128_v44 = vsel %vm126_vm2, inf, %v94_v43  ;;  %v95_v45 = vsel %vm93_vm7, %v77_v39, inf }
  0x95   :  { %v129_v46 = vsel %vm127_vm6, inf, %v95_v45 }
  0x96   :  { %v173_v47 = vpack.c.bf16 %v129_v46, %v128_v44 }
  0x98   :  { %174 = vst [vmem:[#allocation2] sm:$0xff] %v173_v47  }
  0x99   :  { %198 = shalt.err (!%p195_p4)
}
  0x9a   :  { %s199_s28 = scalar_lea.hbm %s276_s4, 128 }
  0x9b   :  { %p200_p5 = scmp.ne.s32.totalorder %s276_s4, %s199_s28  ;;  %p203_p6 = scmp.lt.u32.totalorder %s199_s28, %s276_s4 }
  0x9d   :  { %p205_p7 = pnand %p203_p6, %p200_p5 }
  0x9f   :  { %208 = shalt.err (!%p205_p7)
}
  0xa0   :  { %s215_s7 = smov 64   ;;  %s216_s8 = smov 4  }
  0xa1   :  { %151 = dma.vmem_to_hbm [thread:$0]  %s146_s25, 128, %s276_s4, [#allocation3], %s215_s7, %s215_s7, %s216_s8  }
  0xa2   :  { %209 = dma.done.wait [#allocation3], 128  }
  0xa3   :  { %210 = vsyncadd [#allocation3], 4294967168 }
  0xa4   :  { %155 = vsyncpa [#allocation3], 1 }

</bundles_post_ra>
